<compile_context>
chip_gen: v7x
topology: tpu7x:2x2x1
jax: 0.10.0
libtpu: 0.0.40
codegen_flags: <defaults>
</compile_context>

<pallas_src>
import functools

import jax
import jax.numpy as jnp
import numpy as np
from jax.experimental import pallas as pl
from jax.experimental.pallas import tpu as pltpu


def _round_up(x, m):
    return ((x + m - 1) // m) * m


def _pick_m_tile(m):
    """Rows per grid step (multiple of 8).

    Small M -> single tile (per-step overhead dominates); large M -> at least
    two tiles (both v7x TensorCores get work), capped at 2048 rows so the
    double-buffered pipeline stays a few MiB (fine even for v5e's 16 MiB /
    v7x's 32 MiB scoped-VMEM defaults)."""
    m8 = _round_up(max(m, 1), 8)
    if m8 <= 1024:
        return m8
    half = _round_up((m8 + 1) // 2, 8)
    return min(half, 2048)


# ----------------------------------------------------------------------------
# Pallas kernel: fused prediction heads -> one lane-dense packed bf16 slab
# ----------------------------------------------------------------------------
def _heads_kernel(hs_ref, w1_ref, b1_ref, w2_ref, b2_ref, wo_ref, bo_ref,
                  slab_ref, *, num_cls, d, fuse_out):
    # hs arrives in f32 (single HBM stream); cast to bf16 on the VPU for MXU.
    hs = hs_ref[...].astype(jnp.bfloat16)                     # (TM, D)

    # coord_embed hidden layers: bf16 MXU operands, f32 accumulate/activations.
    h1 = jnp.maximum(
        jnp.dot(hs, w1_ref[...], preferred_element_type=jnp.float32)
        + b1_ref[...], 0.0)
    h2 = jnp.maximum(
        jnp.dot(h1.astype(jnp.bfloat16), w2_ref[...],
                preferred_element_type=jnp.float32) + b2_ref[...], 0.0)
    h2b = h2.astype(jnp.bfloat16)

    # Fused lane-dense output projection (width CP = multiple of 128):
    #   cols [0:num_cls]          = class logits  (w_cls packed into wo rows [0:D))
    #   cols [num_cls:num_cls+2]  = coord, pre-sigmoid (w3 packed into rows [D:2D))
    #   remaining cols            = zero padding
    if fuse_out:
        # Single MXU pass over the concatenated contraction (best when D<=128).
        x_cat = jnp.concatenate([hs, h2b], axis=1)             # (TM, 2D) bf16
        raw = (jnp.dot(x_cat, wo_ref[...], preferred_element_type=jnp.float32)
               + bo_ref[...])
    else:
        raw = (jnp.dot(hs, wo_ref[0:d, :], preferred_element_type=jnp.float32)
               + jnp.dot(h2b, wo_ref[d:2 * d, :],
                         preferred_element_type=jnp.float32)
               + bo_ref[...])

    # (1, CP) column mask, broadcast by the where (cheaper than a full-tile iota).
    col = jax.lax.broadcasted_iota(jnp.int32, (1, raw.shape[1]), 1)
    is_off = (col >= num_cls) & (col < num_cls + 2)
    offs = (jax.nn.sigmoid(raw) - 0.5) * 2.0
    # Single unmasked lane-dense (TM, CP) bf16 store.
    slab_ref[...] = jnp.where(is_off, offs, raw).astype(slab_ref.dtype)


# ----------------------------------------------------------------------------
# One-time parameter packing (done at load time, NOT per forward call)
# ----------------------------------------------------------------------------
def pack_head_params(params):
    f32, bf16 = jnp.float32, jnp.bfloat16
    D = params["w1"].shape[0]
    C1 = params["w_cls"].shape[1]
    CP = _round_up(C1 + 2, 128)            # packed, lane-dense output width
    # Fused output projection weight: rows [0:D) multiply hs (class head),
    # rows [D:2D) multiply h2 (final coord layer); zero-padded to CP lanes.
    wo_hs = jnp.zeros((D, CP), f32).at[:, :C1].set(params["w_cls"])
    wo_h2 = jnp.zeros((D, CP), f32).at[:, C1:C1 + 2].set(params["w3"])
    wo = jnp.concatenate([wo_hs, wo_h2], axis=0).astype(bf16)  # (2D, CP)
    bo = (jnp.zeros((1, CP), f32)
          .at[:, :C1].set(params["b_cls"])
          .at[:, C1:C1 + 2].set(params["b3"]))
    return dict(
        w1=params["w1"].astype(bf16), b1=params["b1"].astype(f32),
        w2=params["w2"].astype(bf16), b2=params["b2"].astype(f32),
        wo=wo, bo=bo, num_cls=C1, cp=CP, d=D)


def predict_heads(hs_last, pq_norm, packed):
    """hs_last: (bs, N, D) f32; pq_norm: (N, 2) f32 normalized point queries."""
    bs, N, D = hs_last.shape
    C1, CP = packed["num_cls"], packed["cp"]
    M = bs * N
    TM = _pick_m_tile(M)
    grid = (pl.cdiv(M, TM),)

    hs_flat = hs_last.reshape(M, D)        # f32, no pad, no wrapper cast
    fuse_out = D <= 128                    # contraction-concat only pays when D is small

    # VMEM footprint estimate (double-buffered hs/slab + resident weights);
    # raise the scoped-VMEM limit only if we'd approach v5e's 16 MiB default.
    est = 2 * (TM * D * 4 + TM * CP * 2) \
        + 2 * (2 * D * D * 2 + 2 * D * CP * 2 + 2 * D * 4 + CP * 4)
    vmem_limit = None
    if est > 12 * 1024 * 1024:
        vmem_limit = min(int(est * 1.5), 48 * 1024 * 1024)

    grid_spec = pltpu.PrefetchScalarGridSpec(
        num_scalar_prefetch=0,
        grid=grid,
        in_specs=[
            pl.BlockSpec((TM, D), lambda i: (i, 0)),       # hs (flattened bs*N), f32
            pl.BlockSpec((D, D), lambda i: (0, 0)),        # w1
            pl.BlockSpec((1, D), lambda i: (0, 0)),        # b1
            pl.BlockSpec((D, D), lambda i: (0, 0)),        # w2
            pl.BlockSpec((1, D), lambda i: (0, 0)),        # b2
            pl.BlockSpec((2 * D, CP), lambda i: (0, 0)),   # fused out-proj weight
            pl.BlockSpec((1, CP), lambda i: (0, 0)),       # fused out-proj bias
        ],
        out_specs=pl.BlockSpec((TM, CP), lambda i: (i, 0)),
    )

    slab = pl.pallas_call(
        functools.partial(_heads_kernel, num_cls=C1, d=D, fuse_out=fuse_out),
        out_shape=jax.ShapeDtypeStruct((M, CP), jnp.bfloat16),
        grid_spec=grid_spec,
        compiler_params=pltpu.CompilerParams(
            dimension_semantics=("parallel",),
            vmem_limit_bytes=vmem_limit),
    )(hs_flat,
      packed["w1"], packed["b1"], packed["w2"], packed["b2"],
      packed["wo"], packed["bo"])

    logits = slab[:, :C1].astype(jnp.float32).reshape(bs, N, C1)
    offsets = slab[:, C1:C1 + 2].astype(jnp.float32).reshape(bs, N, 2)
    points = offsets + pq_norm[None, :, :]     # pred_points = offsets[-1] + pq_norm
    return logits, points, offsets


# ----------------------------------------------------------------------------
# JAX glue mirroring get_point_query / points_queris_embed (training path)
# ----------------------------------------------------------------------------
def points_queries_embed(samples, stride, src, dense_input_embed):
    """samples: (bs, 3, H, W); src: (bs, C, H//stride, W//stride);
    dense_input_embed: (bs, C, H, W). All NCHW."""
    H, W = samples.shape[2:]
    sh = (H + stride // 2 - 1) // stride
    sw = (W + stride // 2 - 1) // stride
    shift_x = ((jnp.arange(sw) + 0.5) * stride).astype(jnp.int32)
    shift_y = ((jnp.arange(sh) + 0.5) * stride).astype(jnp.int32)
    sy, sx = jnp.meshgrid(shift_y, shift_x, indexing="ij")
    points_queries = jnp.stack([sy.flatten(), sx.flatten()], axis=1)   # (N, 2)

    bs, c = dense_input_embed.shape[:2]
    query_embed = dense_input_embed[:, :, points_queries[:, 0], points_queries[:, 1]]
    query_embed = query_embed.reshape(bs, c, sh, sw)
    query_feats = src[:, :, points_queries[:, 0] // stride, points_queries[:, 1] // stride]
    query_feats = query_feats.reshape(bs, c, sh, sw)
    # query_embed.flatten(2).permute(2, 0, 1) -> (N, bs, c)
    query_embed_seq = jnp.transpose(query_embed.reshape(bs, c, -1), (2, 0, 1))
    return query_embed_seq, points_queries, query_feats


# ----------------------------------------------------------------------------
# Full forward of BasePETCount (training path, transformer output given)
# ----------------------------------------------------------------------------
def base_pet_forward(samples, src_8x, dense_input_embed, hs, packed_head, pq_stride):
    # pqs = get_point_query(...)  (train branch)
    query_embed, points_queries, query_feats = points_queries_embed(
        samples, pq_stride, src_8x, dense_input_embed)
    # TODO(synk): hs = self.transformer(encode_src, pos, mask, pqs, ...) is external.

    # predict(): normalize points_queries, run heads on hs[-1]
    H, W = samples.shape[2:]
    pq_norm = points_queries.astype(jnp.float32)
    pq_norm = pq_norm.at[:, 0].divide(float(H)).at[:, 1].divide(float(W))

    logits, points, offsets = predict_heads(hs[-1], pq_norm, packed_head)
    return {
        "pred_logits": logits,
        "pred_points": points,
        "pred_offsets": offsets,
        "img_shape": (H, W),
        "points_queries": pq_norm,
        "pq_stride": pq_stride,
        # intermediate point-query tensors (fed to the external transformer)
        "_query_embed": query_embed,
        "_query_feats": query_feats,
    }


# ----------------------------------------------------------------------------
# Pure-JAX f32 reference for verification (module semantics)
# ----------------------------------------------------------------------------
def reference_heads(hs_last, pq_norm, p):
    logits = hs_last @ p["w_cls"] + p["b_cls"][0]
    x = jax.nn.relu(hs_last @ p["w1"] + p["b1"][0])
    x = jax.nn.relu(x @ p["w2"] + p["b2"][0])
    coord = x @ p["w3"] + p["b3"][0]
    offsets = (jax.nn.sigmoid(coord) - 0.5) * 2.0
    return logits, offsets + pq_norm, offsets


if __name__ == "__main__":
    key = jax.random.PRNGKey(0)

    bs, hidden_dim, num_classes = 2, 32, 1
    H, W = 64, 64
    stride = 8                     # sparse_stride
    L = 2                          # decoder layers in hs
    sh = (H + stride // 2 - 1) // stride
    sw = (W + stride // 2 - 1) // stride
    N = sh * sw

    ks = jax.random.split(key, 12)
    samples = jax.random.normal(ks[0], (bs, 3, H, W), jnp.float32)
    dense_input_embed = jax.random.normal(ks[1], (bs, hidden_dim, H, W), jnp.float32)
    src_8x = jax.random.normal(ks[2], (bs, hidden_dim, H // stride, W // stride), jnp.float32)
    hs = jax.random.normal(ks[3], (L, bs, N, hidden_dim), jnp.float32)

    def lin(k, fan_in, fan_out):
        bound = 1.0 / np.sqrt(fan_in)
        kw, kb = jax.random.split(k)
        w = jax.random.uniform(kw, (fan_in, fan_out), jnp.float32, -bound, bound)
        b = jax.random.uniform(kb, (1, fan_out), jnp.float32, -bound, bound)
        return w, b

    w_cls, b_cls = lin(ks[4], hidden_dim, num_classes + 1)
    w1, b1 = lin(ks[5], hidden_dim, hidden_dim)
    w2, b2 = lin(ks[6], hidden_dim, hidden_dim)
    w3, b3 = lin(ks[7], hidden_dim, 2)
    params = dict(w_cls=w_cls, b_cls=b_cls, w1=w1, b1=b1, w2=w2, b2=b2, w3=w3, b3=b3)

    # Pack / cast head weights ONCE (parameter-load time, not per step).
    packed_head = jax.tree_util.tree_map(
        lambda x: x, pack_head_params(params))
    jax.block_until_ready([v for v in packed_head.values()
                           if isinstance(v, jnp.ndarray)])

    out = base_pet_forward(samples, src_8x, dense_input_embed, hs, packed_head, stride)
    jax.block_until_ready(out)

    # Verify against a pure-JAX f32 reference of predict(). Tolerance reflects
    # bf16 MXU operands + bf16 packed output slab (f32 accumulation inside).
    pq_norm = out["points_queries"]
    ref_logits, ref_points, ref_offsets = reference_heads(hs[-1], pq_norm, params)
    np.testing.assert_allclose(np.asarray(out["pred_logits"]), np.asarray(ref_logits),
                               rtol=5e-2, atol=5e-2)
    np.testing.assert_allclose(np.asarray(out["pred_points"]), np.asarray(ref_points),
                               rtol=5e-2, atol=5e-2)
    np.testing.assert_allclose(np.asarray(out["pred_offsets"]), np.asarray(ref_offsets),
                               rtol=5e-2, atol=5e-2)

    print("KERNEL_OK")
</pallas_src>

<mosaic_0001>
module attributes {stable_mosaic.version = 11 : i64} {
  func.func @_heads_kernel(%arg0: i32, %arg1: memref<128x32xf32, #tpu.memory_space<vmem>>, %arg2: memref<32x32xbf16, #tpu.memory_space<vmem>>, %arg3: memref<1x32xf32, #tpu.memory_space<vmem>>, %arg4: memref<32x32xbf16, #tpu.memory_space<vmem>>, %arg5: memref<1x32xf32, #tpu.memory_space<vmem>>, %arg6: memref<64x128xbf16, #tpu.memory_space<vmem>>, %arg7: memref<1x128xf32, #tpu.memory_space<vmem>>, %arg8: memref<128x128xbf16, #tpu.memory_space<vmem>>) attributes {dimension_semantics = [#tpu.dimension_semantics<parallel>], iteration_bounds = array<i64: 1>, scalar_prefetch = 0 : i64, scratch_operands = 0 : i64, tpu.core_type = #tpu.core_type<tc>, window_params = [{transform_indices = @transform_0, window_bounds = array<i64: 128, 32>}, {pipeline_mode = #tpu.pipeline_mode<synchronous>, transform_indices = @transform_1, window_bounds = array<i64: 32, 32>}, {pipeline_mode = #tpu.pipeline_mode<synchronous>, transform_indices = @transform_2, window_bounds = array<i64: 1, 32>}, {pipeline_mode = #tpu.pipeline_mode<synchronous>, transform_indices = @transform_3, window_bounds = array<i64: 32, 32>}, {pipeline_mode = #tpu.pipeline_mode<synchronous>, transform_indices = @transform_4, window_bounds = array<i64: 1, 32>}, {pipeline_mode = #tpu.pipeline_mode<synchronous>, transform_indices = @transform_5, window_bounds = array<i64: 64, 128>}, {pipeline_mode = #tpu.pipeline_mode<synchronous>, transform_indices = @transform_6, window_bounds = array<i64: 1, 128>}, {transform_indices = @transform_7, window_bounds = array<i64: 128, 128>}]} {
    %c0 = arith.constant 0 : index
    %c0_0 = arith.constant 0 : index
    %0 = vector.load %arg1[%c0, %c0_0] : memref<128x32xf32, #tpu.memory_space<vmem>>, vector<128x32xf32>
    %1 = arith.truncf %0 : vector<128x32xf32> to vector<128x32xbf16>
    %c0_1 = arith.constant 0 : index
    %c0_2 = arith.constant 0 : index
    %2 = vector.load %arg2[%c0_1, %c0_2] : memref<32x32xbf16, #tpu.memory_space<vmem>>, vector<32x32xbf16>
    %cst = arith.constant dense<0.000000e+00> : vector<128x32xf32>
    %3 = tpu.matmul %1, %2, %cst {dimension_numbers = #tpu.dot_dimension_numbers<[1], [0], [0], [1], [0, 0, 1, 1], [], []>} : vector<128x32xbf16>, vector<32x32xbf16>, vector<128x32xf32> -> vector<128x32xf32>
    %c0_3 = arith.constant 0 : index
    %c0_4 = arith.constant 0 : index
    %4 = vector.load %arg3[%c0_3, %c0_4] : memref<1x32xf32, #tpu.memory_space<vmem>>, vector<1x32xf32>
    %5 = vector.broadcast %4 : vector<1x32xf32> to vector<128x32xf32>
    %6 = arith.addf %3, %5 : vector<128x32xf32>
    %cst_5 = arith.constant 0.000000e+00 : f32
    %7 = vector.broadcast %cst_5 : f32 to vector<128x32xf32>
    %8 = arith.maximumf %6, %7 : vector<128x32xf32>
    %9 = arith.truncf %8 : vector<128x32xf32> to vector<128x32xbf16>
    %c0_6 = arith.constant 0 : index
    %c0_7 = arith.constant 0 : index
    %10 = vector.load %arg4[%c0_6, %c0_7] : memref<32x32xbf16, #tpu.memory_space<vmem>>, vector<32x32xbf16>
    %cst_8 = arith.constant dense<0.000000e+00> : vector<128x32xf32>
    %11 = tpu.matmul %9, %10, %cst_8 {dimension_numbers = #tpu.dot_dimension_numbers<[1], [0], [0], [1], [0, 0, 1, 1], [], []>} : vector<128x32xbf16>, vector<32x32xbf16>, vector<128x32xf32> -> vector<128x32xf32>
    %c0_9 = arith.constant 0 : index
    %c0_10 = arith.constant 0 : index
    %12 = vector.load %arg5[%c0_9, %c0_10] : memref<1x32xf32, #tpu.memory_space<vmem>>, vector<1x32xf32>
    %13 = vector.broadcast %12 : vector<1x32xf32> to vector<128x32xf32>
    %14 = arith.addf %11, %13 : vector<128x32xf32>
    %cst_11 = arith.constant 0.000000e+00 : f32
    %15 = vector.broadcast %cst_11 : f32 to vector<128x32xf32>
    %16 = arith.maximumf %14, %15 : vector<128x32xf32>
    %17 = arith.truncf %16 : vector<128x32xf32> to vector<128x32xbf16>
    %18 = tpu.concatenate %1, %17 in 1 : vector<128x32xbf16>, vector<128x32xbf16> -> vector<128x64xbf16>
    %c0_12 = arith.constant 0 : index
    %c0_13 = arith.constant 0 : index
    %19 = vector.load %arg6[%c0_12, %c0_13] : memref<64x128xbf16, #tpu.memory_space<vmem>>, vector<64x128xbf16>
    %cst_14 = arith.constant dense<0.000000e+00> : vector<128x128xf32>
    %20 = tpu.matmul %18, %19, %cst_14 {dimension_numbers = #tpu.dot_dimension_numbers<[1], [0], [0], [1], [0, 0, 1, 1], [], []>} : vector<128x64xbf16>, vector<64x128xbf16>, vector<128x128xf32> -> vector<128x128xf32>
    %c0_15 = arith.constant 0 : index
    %c0_16 = arith.constant 0 : index
    %21 = vector.load %arg7[%c0_15, %c0_16] : memref<1x128xf32, #tpu.memory_space<vmem>>, vector<1x128xf32>
    %22 = vector.broadcast %21 : vector<1x128xf32> to vector<128x128xf32>
    %23 = arith.addf %20, %22 : vector<128x128xf32>
    %24 = tpu.iota {dimensions = array<i32: 1>} : vector<1x128xi32>
    %c2_i32 = arith.constant 2 : i32
    %25 = vector.broadcast %c2_i32 : i32 to vector<1x128xi32>
    %26 = arith.cmpi sge, %24, %25 : vector<1x128xi32>
    %c4_i32 = arith.constant 4 : i32
    %27 = vector.broadcast %c4_i32 : i32 to vector<1x128xi32>
    %28 = arith.cmpi slt, %24, %27 : vector<1x128xi32>
    %29 = arith.andi %26, %28 : vector<1x128xi1>
    %30 = arith.negf %23 : vector<128x128xf32>
    %31 = math.exp %30 : vector<128x128xf32>
    %cst_17 = arith.constant 1.000000e+00 : f32
    %32 = vector.broadcast %cst_17 : f32 to vector<128x128xf32>
    %33 = arith.addf %32, %31 : vector<128x128xf32>
    %34 = arith.divf %32, %33 : vector<128x128xf32>
    %cst_18 = arith.constant 5.000000e-01 : f32
    %35 = vector.broadcast %cst_18 : f32 to vector<128x128xf32>
    %36 = arith.subf %34, %35 : vector<128x128xf32>
    %cst_19 = arith.constant 2.000000e+00 : f32
    %37 = vector.broadcast %cst_19 : f32 to vector<128x128xf32>
    %38 = arith.mulf %36, %37 : vector<128x128xf32>
    %39 = vector.shape_cast %29 : vector<1x128xi1> to vector<1x128xi1>
    %40 = vector.broadcast %39 : vector<1x128xi1> to vector<128x128xi1>
    %41 = arith.select %40, %38, %23 : vector<128x128xi1>, vector<128x128xf32>
    %42 = arith.truncf %41 : vector<128x128xf32> to vector<128x128xbf16>
    %c0_20 = arith.constant 0 : index
    %c0_21 = arith.constant 0 : index
    %43 = vector.load %arg8[%c0_20, %c0_21] : memref<128x128xbf16, #tpu.memory_space<vmem>>, vector<128x128xbf16>
    tpu.vector_store %arg8[%c0_20, %c0_21], %42 {strides = array<i32>} : memref<128x128xbf16, #tpu.memory_space<vmem>>, vector<128x128xbf16>,
    return
  }
  func.func @transform_0(%arg0: i32) -> (i32, i32) {
    %c0_i32 = arith.constant 0 : i32
    %c0_i32_0 = arith.constant 0 : i32
    return %arg0, %c0_i32 : i32, i32
  }
  func.func @transform_1(%arg0: i32) -> (i32, i32) {
    %c0_i32 = arith.constant 0 : i32
    %c0_i32_0 = arith.constant 0 : i32
    %c0_i32_1 = arith.constant 0 : i32
    return %c0_i32, %c0_i32_0 : i32, i32
  }
  func.func @transform_2(%arg0: i32) -> (i32, i32) {
    %c0_i32 = arith.constant 0 : i32
    %c0_i32_0 = arith.constant 0 : i32
    %c0_i32_1 = arith.constant 0 : i32
    return %c0_i32, %c0_i32_0 : i32, i32
  }
  func.func @transform_3(%arg0: i32) -> (i32, i32) {
    %c0_i32 = arith.constant 0 : i32
    %c0_i32_0 = arith.constant 0 : i32
    %c0_i32_1 = arith.constant 0 : i32
    return %c0_i32, %c0_i32_0 : i32, i32
  }
  func.func @transform_4(%arg0: i32) -> (i32, i32) {
    %c0_i32 = arith.constant 0 : i32
    %c0_i32_0 = arith.constant 0 : i32
    %c0_i32_1 = arith.constant 0 : i32
    return %c0_i32, %c0_i32_0 : i32, i32
  }
  func.func @transform_5(%arg0: i32) -> (i32, i32) {
    %c0_i32 = arith.constant 0 : i32
    %c0_i32_0 = arith.constant 0 : i32
    %c0_i32_1 = arith.constant 0 : i32
    return %c0_i32, %c0_i32_0 : i32, i32
  }
  func.func @transform_6(%arg0: i32) -> (i32, i32) {
    %c0_i32 = arith.constant 0 : i32
    %c0_i32_0 = arith.constant 0 : i32
    %c0_i32_1 = arith.constant 0 : i32
    return %c0_i32, %c0_i32_0 : i32, i32
  }
  func.func @transform_7(%arg0: i32) -> (i32, i32) {
    %c0_i32 = arith.constant 0 : i32
    %c0_i32_0 = arith.constant 0 : i32
    return %arg0, %c0_i32 : i32, i32
  }
}

</mosaic_0001>

<bundles_post_ra>
// kernel: tpu_custom_call.1
= control target key start
LH: loop header
LB: loop body
LE: loop exit
PB: predicated region body
PF: predicated region fallthrough
CT: control target
= control target key end

     0   :  { %vm75_vm0 = vcmask 261120   ;;  %s1503_s0 = inlined_call_operand.vmem [shape: f32[128,32], index: 0, kind: input, shape index: {}]   ;;  %s1504_s1 = inlined_call_operand.vmem [shape: bf16[32,32], index: 1, kind: input, shape index: {}]   ;;  %s1505_s2 = inlined_call_operand.vmem [shape: f32[1,32], index: 2, kind: input, shape index: {}]   ;;  %s1506_s3 = inlined_call_operand.vmem [shape: bf16[32,32], index: 3, kind: input, shape index: {}]   ;;  %s1507_s4 = inlined_call_operand.vmem [shape: f32[1,32], index: 4, kind: input, shape index: {}]   ;;  %s1508_s5 = inlined_call_operand.vmem [shape: bf16[64,128], index: 5, kind: input, shape index: {}]   ;;  %s1509_s6 = inlined_call_operand.vmem [shape: f32[1,128], index: 6, kind: input, shape index: {}]   ;;  %s1510_s7 = inlined_call_operand.hbm [shape: bf16[128,128], index: 7, kind: output, shape index: {}]  }
   0x1   :  { %v1079_v0 = vld [vmem:[%s1504_s1] sm:$0xff]   ;;  %v1080_v1 = vld [vmem:[%s1504_s1 + $0x8] sm:$0xff]   ;;  %v30_v5 = vld [vmem:[%s1503_s0 + $0x10] sm:$0xff] }
   0x2   :  { %1007 = vmatprep.subr.bf16.mxu0 %v1079_v0  ;;  %v28_v2 = vld [vmem:[%s1503_s0] sm:$0xff]  ;;  %v29_v3 = vld [vmem:[%s1503_s0 + $0x8] sm:$0xff]  ;;  %1071 = vmatprep.subr.bf16.mxu1 %v1079_v0  ;;  %v31_v6 = vld [vmem:[%s1503_s0 + $0x18] sm:$0xff] }
   0x3   :  { %1008 = vmatpush3.bf16.msra.mxu0 %v1079_v0  ;;  %v1231_v4 = vpack.c.bf16 %v29_v3, %v28_v2  ;;  %1073 = vmatpush3.bf16.msra.mxu1 %v1079_v0  ;;  %v32_v7 = vld [vmem:[%s1503_s0 + $0x20] sm:$0xff]  ;;  %v33_v8 = vld [vmem:[%s1503_s0 + $0x28] sm:$0xff]  ;;  %v38_v11 = vld [vmem:[%s1503_s0 + $0x50] sm:$0xff]  ;;  %v1259_v13 = vpack.c.bf16 %v31_v6, %v30_v5 }
   0x4   :  { %1009 = vmatprep.subr.bf16.mxu0 %v1080_v1  ;;  %1072 = vmatprep.subr.bf16.mxu1 %v1080_v1  ;;  %v36_v9 = vld [vmem:[%s1503_s0 + $0x40] sm:$0xff]  ;;  %v37_v10 = vld [vmem:[%s1503_s0 + $0x48] sm:$0xff]  ;;  %v39_v12 = vld [vmem:[%s1503_s0 + $0x58] sm:$0xff]  ;;  %v1271_v18 = vpack.c.bf16 %v33_v8, %v32_v7 }
   0x5   :  { %1011 = vmatprep.mubr.msk.bf16.mxu0 %vm75_vm0, %v1231_v4  ;;  %v1261_v14 = vpack.c.bf16 %v37_v10, %v36_v9  ;;  %v1263_v15 = vpack.c.bf16 %v39_v12, %v38_v11  ;;  %v40_v16 = vld [vmem:[%s1503_s0 + $0x60] sm:$0xff]  ;;  %v41_v17 = vld [vmem:[%s1503_s0 + $0x68] sm:$0xff]  ;;  %v34_v21 = vld [vmem:[%s1503_s0 + $0x30] sm:$0xff] }
   0x6   :  { %v1273_v19 = vpack.c.bf16 %v41_v17, %v40_v16  ;;  %v1081_v20 = vld [vmem:[%s1506_s3] sm:$0xff]   ;;  %v35_v22 = vld [vmem:[%s1503_s0 + $0x38] sm:$0xff]  ;;  %v42_v23 = vld [vmem:[%s1503_s0 + $0x70] sm:$0xff] }
   0x7   :  { %1010 = vmatpush3.bf16.msra.mxu0 %v1080_v1  ;;  %1074 = vmatpush3.bf16.msra.mxu1 %v1080_v1  ;;  %v43_v24 = vld [vmem:[%s1503_s0 + $0x78] sm:$0xff] }
   0x8   :  { %1019 = vmatprep.mubr.msk.bf16.mxu1 %vm75_vm0, %v1261_v14 }
   0xa   :  { %1012 = vmatmul.mubr.msk.bf16.vlgmr.msra.gmra.mrb[0].mxu0 %vm75_vm0, %v1259_v13  ;;  %1020 = vmatmul.mubr.msk.bf16.vlgmr.msra.gmra.mrb[0].mxu1 %vm75_vm0, %v1263_v15 }
   0xb   :  { %1015 = vmatprep.mubr.msk.bf16.mxu0 %vm75_vm0, %v1271_v18  ;;  %1023 = vmatprep.mubr.msk.bf16.mxu1 %vm75_vm0, %v1273_v19 }
   0xc   :  { %12 = vsyncpa [#allocation3], 0  ;;  %1027 = vmatprep.subr.bf16.mxu1 %v1081_v20  ;;  %v1300_v25 = vpack.c.bf16 %v35_v22, %v34_v21  ;;  %v1302_v26 = vpack.c.bf16 %v43_v24, %v42_v23  ;;  %v1082_v27 = vld [vmem:[%s1506_s3 + $0x8] sm:$0xff]   ;;  %v829_v28 = vld [vmem:[%s1505_s2] ss:$0 sm:$0xff]  ;;  %vm468_vm1 = vcmask 523264  }
   0xd   :  { %1028 = vmatpush3.bf16.msra.mxu1 %v1081_v20 }
   0xe   :  { %1029 = vmatprep.subr.bf16.mxu1 %v1082_v27 }
  0x11   :  { %1030 = vmatpush3.bf16.msra.mxu1 %v1082_v27 }
  0x12   :  { %1016 = vmatmul.mubr.msk.bf16.gmra.mrb[4].mxu0 %vm75_vm0, %v1300_v25  ;;  %1024 = vmatmul.mubr.msk.bf16.gmra.mrb[4].mxu1 %vm75_vm0, %v1302_v26 }
  0xdd   :  { %v1013_v29 = vpop.f32.mrb[0].mxu0  ;;  %v1021_v30 = vpop.f32.mrb[0].mxu1 }
  0xde   :  { %v143_v31 = vadd.f32 %v1013_v29, %v829_v28  ;;  %v134_v32 = vpop.f32.mrb[1].mxu0  ;;  %v175_v33 = vadd.f32 %v1021_v30, %v829_v28  ;;  %v166_v34 = vpop.f32.mrb[1].mxu1  ;;  %v1084_v30 = vld [vmem:[%s1508_s5 + $0x8] sm:$0xff]  }
  0xdf   :  { %v135_v35 = vadd.f32 %v829_v28, %v134_v32  ;;  %v1014_v36 = vpop.f32.mrb[2].mxu0  ;;  %v167_v37 = vadd.f32 %v829_v28, %v166_v34  ;;  %v1022_v38 = vpop.f32.mrb[2].mxu1  ;;  %v1086_v32 = vld [vmem:[%s1508_s5 + $0x18] sm:$0xff]  }
  0xe0   :  { %v146_v39 = vadd.f32 %v1014_v36, %v829_v28  ;;  %v137_v40 = vpop.f32.mrb[3].mxu0  ;;  %v207_v41 = vmax.f32 %v175_v33, 0.0  ;;  %v178_v42 = vadd.f32 %v1022_v38, %v829_v28  ;;  %v169_v43 = vpop.f32.mrb[3].mxu1  ;;  %v199_v47 = vmax.f32 %v143_v31, 0.0  ;;  %v1085_v31 = vld [vmem:[%s1508_s5 + $0x10] sm:$0xff]  }
  0xe1   :  { %v138_v44 = vadd.f32 %v829_v28, %v137_v40  ;;  %v205_v45 = vmax.f32 %v167_v37, 0.0  ;;  %v170_v46 = vadd.f32 %v829_v28, %v169_v43  ;;  %v197_v50 = vmax.f32 %v135_v35, 0.0  ;;  %v840_v33 = vld [vmem:[%s1507_s4] ss:$0 sm:$0xff]  ;;  %s1175_s4 = smov 32  }
  0xe2   :  { %v200_v48 = vmax.f32 %v146_v39, 0.0  ;;  %v208_v49 = vmax.f32 %v178_v42, 0.0 }
  0xe3   :  { %v198_v51 = vmax.f32 %v138_v44, 0.0  ;;  %v206_v52 = vmax.f32 %v170_v46, 0.0 }
  0xe4   :  { %v214_v53 = vpack.c.bf16 %v200_v48, %v199_v47  ;;  %v218_v54 = vpack.c.bf16 %v208_v49, %v207_v41 }
  0xe5   :  { %v213_v55 = vpack.c.bf16 %v198_v51, %v197_v50  ;;  %v1017_v56 = vpop.f32.mrb[4].mxu0  ;;  %v217_v57 = vpack.c.bf16 %v206_v52, %v205_v45  ;;  %v1025_v58 = vpop.f32.mrb[4].mxu1 }
  0xe6   :  { %v159_v59 = vadd.f32 %v1017_v56, %v829_v28  ;;  %v150_v60 = vpop.f32.mrb[5].mxu0  ;;  %v191_v61 = vadd.f32 %v1025_v58, %v829_v28  ;;  %v182_v62 = vpop.f32.mrb[5].mxu1 }
  0xe7   :  { %v151_v63 = vadd.f32 %v829_v28, %v150_v60  ;;  %v1018_v0 = vpop.f32.mrb[6].mxu0  ;;  %1031 = vmatprep.mubr.msk.bf16.mxu1 %vm75_vm0, %v213_v55  ;;  %v183_v1 = vadd.f32 %v829_v28, %v182_v62  ;;  %v1026_v2 = vpop.f32.mrb[6].mxu1 }
  0xe8   :  { %v162_v3 = vadd.f32 %v1018_v0, %v829_v28  ;;  %v153_v5 = vpop.f32.mrb[7].mxu0  ;;  %1032 = vmatmul.mubr.msk.bf16.vlgmr.msra.gmra.mrb[8].mxu1 %vm75_vm0, %v214_v53  ;;  %v211_v6 = vmax.f32 %v191_v61, 0.0  ;;  %v194_v7 = vadd.f32 %v1026_v2, %v829_v28  ;;  %v185_v8 = vpop.f32.mrb[7].mxu1  ;;  %v203_v12 = vmax.f32 %v159_v59, 0.0 }
  0xe9   :  { %v154_v9 = vadd.f32 %v829_v28, %v153_v5  ;;  %v209_v10 = vmax.f32 %v183_v1, 0.0  ;;  %v186_v11 = vadd.f32 %v829_v28, %v185_v8  ;;  %v201_v20 = vmax.f32 %v151_v63, 0.0  ;;  %v1083_v28 = vld [vmem:[%s1508_s5] sm:$0xff]  }
  0xea   :  { %v204_v16 = vmax.f32 %v162_v3, 0.0  ;;  %v212_v17 = vmax.f32 %v194_v7, 0.0  ;;  %1047 = vmatprep.subr.bf16.mxu0 %v1083_v28 }
  0xeb   :  { %v202_v21 = vmax.f32 %v154_v9, 0.0  ;;  %v210_v22 = vmax.f32 %v186_v11, 0.0  ;;  %1048 = vmatpush3.bf16.msra.mxu0 %v1083_v28 }
  0xec   :  { %v216_v23 = vpack.c.bf16 %v204_v16, %v203_v12  ;;  %v220_v24 = vpack.c.bf16 %v212_v17, %v211_v6  ;;  %1049 = vmatprep.subr.bf16.mxu0 %v1084_v30 }
  0xed   :  { %v215_v27 = vpack.c.bf16 %v202_v21, %v201_v20  ;;  %v219_v29 = vpack.c.bf16 %v210_v22, %v209_v10 }
  0xef   :  { %1035 = vmatprep.mubr.msk.bf16.mxu1 %vm75_vm0, %v215_v27  ;;  %1050 = vmatpush3.bf16.msra.mxu0 %v1084_v30 }
  0xf0   :  { %1036 = vmatmul.mubr.msk.bf16.gmra.mrb[12].mxu1 %vm75_vm0, %v216_v23  ;;  %1051 = vmatprep.subr.bf16.mxu0 %v1085_v31 }
  0xf1   :  { %1039 = vmatprep.mubr.msk.bf16.mxu1 %vm75_vm0, %v217_v57 }
  0xf3   :  { %1052 = vmatpush3.bf16.msra.mxu0 %v1085_v31 }
  0xf4   :  { %1053 = vmatprep.subr.bf16.mxu0 %v1086_v32 }
  0xf7   :  { %1054 = vmatpush3.bf16.msra.mxu0 %v1086_v32 }
  0xf8   :  { %1040 = vmatmul.mubr.msk.bf16.gmra.mrb[16].mxu1 %vm75_vm0, %v218_v54 }
  0xf9   :  { %1043 = vmatprep.mubr.msk.bf16.mxu1 %vm75_vm0, %v219_v29 }
 0x100   :  { %1044 = vmatmul.mubr.msk.bf16.gmra.mrb[20].mxu1 %vm75_vm0, %v220_v24 }
 0x1bb   :  { %v1033_v34 = vpop.f32.mrb[8].mxu1 }
 0x1bc   :  { %v311_v35 = vadd.f32 %v1033_v34, %v840_v33  ;;  %v302_v36 = vpop.f32.mrb[9].mxu1 }
 0x1bd   :  { %v303_v37 = vadd.f32 %v840_v33, %v302_v36  ;;  %v1034_v38 = vpop.f32.mrb[10].mxu1 }
 0x1be   :  { %v314_v39 = vadd.f32 %v1034_v38, %v840_v33  ;;  %v305_v40 = vpop.f32.mrb[11].mxu1  ;;  %v367_v42 = vmax.f32 %v311_v35, 0.0 }
 0x1bf   :  { %v306_v41 = vadd.f32 %v840_v33, %v305_v40  ;;  %v365_v44 = vmax.f32 %v303_v37, 0.0 }
 0x1c0   :  { %v368_v43 = vmax.f32 %v314_v39, 0.0 }
 0x1c1   :  { %v366_v45 = vmax.f32 %v306_v41, 0.0 }
 0x1c2   :  { %v382_v46 = vpack.c.bf16 %v368_v43, %v367_v42 }
 0x1c3   :  { %v1037_v47 = vpop.f32.mrb[12].mxu1  ;;  %v381_v48 = vpack.c.bf16 %v366_v45, %v365_v44 }
 0x1c4   :  { %v327_v49 = vadd.f32 %v1037_v47, %v840_v33  ;;  %v318_v50 = vpop.f32.mrb[13].mxu1 }
 0x1c5   :  { %v319_v51 = vadd.f32 %v840_v33, %v318_v50  ;;  %v1038_v52 = vpop.f32.mrb[14].mxu1  ;;  %397 = vrot.lane.b32.xlu0 %v381_v48, %s1175_s4 }
 0x1c6   :  { %v330_v53 = vadd.f32 %v1038_v52, %v840_v33  ;;  %v321_v54 = vpop.f32.mrb[15].mxu1  ;;  %v371_v56 = vmax.f32 %v327_v49, 0.0 }
 0x1c7   :  { %v322_v55 = vadd.f32 %v840_v33, %v321_v54  ;;  %v369_v58 = vmax.f32 %v319_v51, 0.0 }
 0x1c8   :  { %v372_v57 = vmax.f32 %v330_v53, 0.0 }
 0x1c9   :  { %v370_v59 = vmax.f32 %v322_v55, 0.0  ;;  %399 = vrot.lane.b32.xlu0 %v382_v46, %s1175_s4 }
 0x1ca   :  { %v384_v60 = vpack.c.bf16 %v372_v57, %v371_v56 }
 0x1cb   :  { %v1041_v61 = vpop.f32.mrb[16].mxu1  ;;  %v383_v62 = vpack.c.bf16 %v370_v59, %v369_v58 }
 0x1cc   :  { %v343_v63 = vadd.f32 %v1041_v61, %v840_v33  ;;  %v334_v0 = vpop.f32.mrb[17].mxu1 }
 0x1cd   :  { %v335_v1 = vadd.f32 %v840_v33, %v334_v0  ;;  %v1042_v2 = vpop.f32.mrb[18].mxu1  ;;  %401 = vrot.lane.b32.xlu1 %v383_v62, %s1175_s4 }
 0x1ce   :  { %v346_v3 = vadd.f32 %v1042_v2, %v840_v33  ;;  %v337_v5 = vpop.f32.mrb[19].mxu1  ;;  %v375_v7 = vmax.f32 %v343_v63, 0.0 }
 0x1cf   :  { %v338_v6 = vadd.f32 %v840_v33, %v337_v5  ;;  %v373_v9 = vmax.f32 %v335_v1, 0.0 }
 0x1d0   :  { %v376_v8 = vmax.f32 %v346_v3, 0.0 }
 0x1d1   :  { %v374_v10 = vmax.f32 %v338_v6, 0.0  ;;  %403 = vrot.lane.b32.xlu1 %v384_v60, %s1175_s4 }
 0x1d2   :  { %v386_v11 = vpack.c.bf16 %v376_v8, %v375_v7 }
 0x1d3   :  { %v385_v12 = vpack.c.bf16 %v374_v10, %v373_v9  ;;  %v1045_v16 = vpop.f32.mrb[20].mxu1 }
 0x1d4   :  { %v359_v17 = vadd.f32 %v1045_v16, %v840_v33  ;;  %v350_v20 = vpop.f32.mrb[21].mxu1  ;;  %v582_v16 = vlaneseq }
 0x1d5   :  { %v351_v21 = vadd.f32 %v840_v33, %v350_v20  ;;  %v1046_v22 = vpop.f32.mrb[22].mxu1  ;;  %407 = vrot.lane.b32.xlu1 %v386_v11, %s1175_s4  ;;  %405 = vrot.lane.b32.xlu0 %v385_v12, %s1175_s4 }
 0x1d6   :  { %v362_v23 = vadd.f32 %v1046_v22, %v840_v33  ;;  %v353_v24 = vpop.f32.mrb[23].mxu1  ;;  %v379_v29 = vmax.f32 %v359_v17, 0.0 }
 0x1d7   :  { %v354_v27 = vadd.f32 %v840_v33, %v353_v24  ;;  %v377_v30 = vmax.f32 %v351_v21, 0.0 }
 0x1d8   :  { %v380_v28 = vmax.f32 %v362_v23, 0.0 }
 0x1d9   :  { %v378_v31 = vmax.f32 %v354_v27, 0.0 }
 0x1da   :  { %v388_v32 = vpack.c.bf16 %v380_v28, %v379_v29 }
 0x1db   :  { %v387_v34 = vpack.c.bf16 %v378_v31, %v377_v30  ;;  %v583_v31 = vand.u32 127, %v582_v16 }
 0x1dc   :  { %411 = vrot.lane.b32.xlu1 %v388_v32, %s1175_s4 }
 0x1dd   :  { %409 = vrot.lane.b32.xlu0 %v387_v34, %s1175_s4  ;;  %vm584_vm2 = vcmp.ge.s32.totalorder %v583_v31, 2  ;;  %vm585_vm3 = vcmp.lt.s32.totalorder %v583_v31, 4 }
 0x1de   :  { %vm1439_vm4 = vmand %vm584_vm2, %vm585_vm3 }
 0x237   :  { %v398_v35 = vpop.permute.xlu0 %397 }
 0x238   :  { %v414_v36 = vsel %vm75_vm0, %v1231_v4, %v398_v35 }
 0x239   :  { %1055 = vmatprep.mubr.msk.bf16.mxu0 %vm468_vm1, %v414_v36 }
 0x23b   :  { %v400_v37 = vpop.permute.xlu0 %399 }
 0x23c   :  { %v416_v33 = vsel %vm75_vm0, %v1259_v13, %v400_v37 }
 0x23d   :  { %1056 = vmatmul.mubr.msk.bf16.vlgmr.msra.gmra.mrb[8].mxu0 %vm468_vm1, %v416_v33 }
 0x23f   :  { %v402_v38 = vpop.permute.xlu1 %401 }
 0x240   :  { %v418_v39 = vsel %vm75_vm0, %v1271_v18, %v402_v38 }
 0x241   :  { %1059 = vmatprep.mubr.msk.bf16.mxu0 %vm468_vm1, %v418_v39 }
 0x243   :  { %v404_v40 = vpop.permute.xlu1 %403 }
 0x244   :  { %v420_v41 = vsel %vm75_vm0, %v1300_v25, %v404_v40 }
 0x245   :  { %1060 = vmatmul.mubr.msk.bf16.gmra.mrb[12].mxu0 %vm468_vm1, %v420_v41 }
 0x247   :  { %v406_v4 = vpop.permute.xlu0 %405  ;;  %v408_v43 = vpop.permute.xlu1 %407 }
 0x248   :  { %v422_v42 = vsel %vm75_vm0, %v1261_v14, %v406_v4  ;;  %v424_v13 = vsel %vm75_vm0, %v1263_v15, %v408_v43  ;;  %v1372_v14 = vld [vmem:[%s1509_s6] ss:$0 sm:$0xff]  ;;  %s1176_s6 = smov [#allocation2]  }
 0x249   :  { %1063 = vmatprep.mubr.msk.bf16.mxu0 %vm468_vm1, %v422_v42  ;;  %s818_s26 = sshll.u32 %s1176_s6, 4  ;;  %s819_s26 = int_to_ptr.vmem [resolvable:$true] %s818_s26 }
 0x24a   :  { %s1151_s27 = scalar_lea.vmem %s819_s26, 1024  ;;  %p1156_p1 = scmp.lt.s32.totalorder %s819_s26, %s819_s26 }
 0x24b   :  { %p1152_p0 = scmp.ne.s32.totalorder %s819_s26, %s1151_s27  ;;  %p1157_p2 = scmp.lt.s32.totalorder %s1151_s27, %s1151_s27 }
 0x24d   :  { %1064 = vmatmul.mubr.msk.bf16.gmra.mrb[16].mxu0 %vm468_vm1, %v424_v13  ;;  %p1158_p3 = por %p1157_p2, %p1156_p1 }
 0x24e   :  { %v412_v45 = vpop.permute.xlu1 %411 }
 0x24f   :  { %v410_v18 = vpop.permute.xlu0 %409  ;;  %v428_v25 = vsel %vm75_vm0, %v1302_v26, %v412_v45  ;;  %p1159_p4 = pnand %p1158_p3, %p1152_p0 }
 0x250   :  { %v426_v44 = vsel %vm75_vm0, %v1273_v19, %v410_v18 }
 0x251   :  { %1067 = vmatprep.mubr.msk.bf16.mxu0 %vm468_vm1, %v426_v44 }
 0x255   :  { %1068 = vmatmul.mubr.msk.bf16.gmra.mrb[20].mxu0 %vm468_vm1, %v428_v25 }
 0x310   :  { %v1057_v15 = vpop.f32.mrb[8].mxu0 }
 0x311   :  { %v1375_v46 = vadd.f32 %v1057_v15, %v1372_v14  ;;  %v519_v47 = vpop.f32.mrb[9].mxu0 }
 0x312   :  { %v1378_v19 = vadd.f32 %v1372_v14, %v519_v47  ;;  %v1058_v48 = vpop.f32.mrb[10].mxu0 }
 0x313   :  { %v866_v49 = vmul.f32 -1.442695, %v1375_v46  ;;  %v1382_v26 = vadd.f32 %v1058_v48, %v1372_v14  ;;  %v522_v50 = vpop.f32.mrb[11].mxu0 }
 0x314   :  { %v864_v51 = vmul.f32 -1.442695, %v1378_v19  ;;  %v1386_v52 = vadd.f32 %v1372_v14, %v522_v50 }
 0x315   :  { %1087 = vpow2.f32 %v866_v49  ;;  %v867_v53 = vmul.f32 -1.442695, %v1382_v26 }
 0x316   :  { %1089 = vpow2.f32 %v864_v51  ;;  %v865_v54 = vmul.f32 -1.442695, %v1386_v52 }
 0x317   :  { %1091 = vpow2.f32 %v867_v53 }
 0x318   :  { %1093 = vpow2.f32 %v865_v54  ;;  %v1061_v55 = vpop.f32.mrb[12].mxu0 }
 0x319   :  { %v1391_v56 = vadd.f32 %v1061_v55, %v1372_v14  ;;  %v535_v57 = vpop.f32.mrb[13].mxu0 }
 0x31a   :  { %v1394_v58 = vadd.f32 %v1372_v14, %v535_v57  ;;  %v1062_v59 = vpop.f32.mrb[14].mxu0 }
 0x31b   :  { %v870_v60 = vmul.f32 -1.442695, %v1391_v56  ;;  %v1398_v61 = vadd.f32 %v1062_v59, %v1372_v14  ;;  %v538_v62 = vpop.f32.mrb[15].mxu0 }
 0x31c   :  { %v868_v63 = vmul.f32 -1.442695, %v1394_v58  ;;  %v1402_v0 = vadd.f32 %v1372_v14, %v538_v62 }
 0x31d   :  { %1095 = vpow2.f32 %v870_v60  ;;  %v871_v1 = vmul.f32 -1.442695, %v1398_v61 }
 0x31e   :  { %1097 = vpow2.f32 %v868_v63  ;;  %v869_v2 = vmul.f32 -1.442695, %v1402_v0 }
 0x31f   :  { %v1088_v3 = vpop.eup %1087  ;;  %1099 = vpow2.f32 %v871_v1 }
 0x320   :  { %v1090_v5 = vpop.eup %1089  ;;  %v637_v6 = vadd.f32 1.0, %v1088_v3  ;;  %1101 = vpow2.f32 %v869_v2  ;;  %v1065_v7 = vpop.f32.mrb[16].mxu0 }
 0x321   :  { %v1092_v8 = vpop.eup %1091  ;;  %v635_v9 = vadd.f32 1.0, %v1090_v5  ;;  %v1407_v10 = vadd.f32 %v1065_v7, %v1372_v14  ;;  %v551_v11 = vpop.f32.mrb[17].mxu0 }
 0x322   :  { %v1094_v12 = vpop.eup %1093  ;;  %1103 = vrcp.f32 %v637_v6  ;;  %v638_v17 = vadd.f32 1.0, %v1092_v8  ;;  %v1410_v20 = vadd.f32 %v1372_v14, %v551_v11  ;;  %v1066_v21 = vpop.f32.mrb[18].mxu0 }
 0x323   :  { %1105 = vrcp.f32 %v635_v9  ;;  %v636_v22 = vadd.f32 1.0, %v1094_v12  ;;  %v874_v23 = vmul.f32 -1.442695, %v1407_v10  ;;  %v1414_v24 = vadd.f32 %v1066_v21, %v1372_v14  ;;  %v554_v27 = vpop.f32.mrb[19].mxu0 }
 0x324   :  { %1107 = vrcp.f32 %v638_v17  ;;  %v872_v29 = vmul.f32 -1.442695, %v1410_v20  ;;  %v1418_v28 = vadd.f32 %v1372_v14, %v554_v27 }
 0x325   :  { %1109 = vrcp.f32 %v636_v22  ;;  %v875_v30 = vmul.f32 -1.442695, %v1414_v24 }
 0x326   :  { %1111 = vpow2.f32 %v874_v23  ;;  %v873_v32 = vmul.f32 -1.442695, %v1418_v28 }
 0x327   :  { %v1096_v34 = vpop.eup %1095  ;;  %1113 = vpow2.f32 %v872_v29 }
 0x328   :  { %v1098_v35 = vpop.eup %1097  ;;  %v641_v36 = vadd.f32 1.0, %v1096_v34  ;;  %1115 = vpow2.f32 %v875_v30  ;;  %v1069_v37 = vpop.f32.mrb[20].mxu0 }
 0x329   :  { %v1100_v33 = vpop.eup %1099  ;;  %v639_v38 = vadd.f32 1.0, %v1098_v35  ;;  %1117 = vpow2.f32 %v873_v32  ;;  %v1423_v39 = vadd.f32 %v1069_v37, %v1372_v14  ;;  %v567_v40 = vpop.f32.mrb[21].mxu0 }
 0x32a   :  { %v1102_v41 = vpop.eup %1101  ;;  %1119 = vrcp.f32 %v641_v36  ;;  %v642_v4 = vadd.f32 1.0, %v1100_v33  ;;  %v1426_v42 = vadd.f32 %v1372_v14, %v567_v40  ;;  %v1070_v43 = vpop.f32.mrb[22].mxu0 }
 0x32b   :  { %1121 = vrcp.f32 %v639_v38  ;;  %v640_v13 = vadd.f32 1.0, %v1102_v41  ;;  %v878_v18 = vmul.f32 -1.442695, %v1423_v39  ;;  %v1430_v44 = vadd.f32 %v1070_v43, %v1372_v14  ;;  %v570_v45 = vpop.f32.mrb[23].mxu0 }
 0x32c   :  { %v1104_v25 = vpop.eup %1103  ;;  %1123 = vrcp.f32 %v642_v4  ;;  %v876_v15 = vmul.f32 -1.442695, %v1426_v42  ;;  %v1434_v47 = vadd.f32 %v1372_v14, %v570_v45 }
 0x32d   :  { %v1106_v48 = vpop.eup %1105  ;;  %v882_v49 = vadd.f32 -0.5, %v1104_v25  ;;  %1125 = vrcp.f32 %v640_v13  ;;  %v879_v50 = vmul.f32 -1.442695, %v1430_v44 }
 0x32e   :  { %v1108_v51 = vpop.eup %1107  ;;  %v880_v53 = vadd.f32 -0.5, %v1106_v48  ;;  %1127 = vpow2.f32 %v878_v18  ;;  %v877_v54 = vmul.f32 -1.442695, %v1434_v47 }
 0x32f   :  { %v1110_v55 = vpop.eup %1109  ;;  %v701_v59 = vmul.f32 2.0, %v882_v49  ;;  %v883_v60 = vadd.f32 -0.5, %v1108_v51  ;;  %1129 = vpow2.f32 %v876_v15 }
 0x330   :  { %v1112_v14 = vpop.eup %1111  ;;  %v699_v62 = vmul.f32 2.0, %v880_v53  ;;  %v881_v63 = vadd.f32 -0.5, %v1110_v55  ;;  %1131 = vpow2.f32 %v879_v50 }
 0x331   :  { %v1114_v1 = vpop.eup %1113  ;;  %v702_v2 = vmul.f32 2.0, %v883_v60  ;;  %v645_v3 = vadd.f32 1.0, %v1112_v14  ;;  %1133 = vpow2.f32 %v877_v54  ;;  %v719_v6 = vsel %vm1439_vm4, %v701_v59, %v1375_v46 }
 0x332   :  { %v1116_v5 = vpop.eup %1115  ;;  %v700_v7 = vmul.f32 2.0, %v881_v63  ;;  %v643_v8 = vadd.f32 1.0, %v1114_v1  ;;  %v717_v11 = vsel %vm1439_vm4, %v699_v62, %v1378_v19 }
 0x333   :  { %v1118_v9 = vpop.eup %1117  ;;  %v720_v12 = vsel %vm1439_vm4, %v702_v2, %v1382_v26  ;;  %1135 = vrcp.f32 %v645_v3  ;;  %v646_v16 = vadd.f32 1.0, %v1116_v5 }
 0x334   :  { %v1120_v17 = vpop.eup %1119  ;;  %v936_v21 = vpack.c.bf16 %v720_v12, %v719_v6  ;;  %v718_v22 = vsel %vm1439_vm4, %v700_v7, %v1386_v52  ;;  %1137 = vrcp.f32 %v643_v8  ;;  %v644_v46 = vadd.f32 1.0, %v1118_v9 }
 0x335   :  { %v1122_v23 = vpop.eup %1121  ;;  %v931_v27 = vpack.c.bf16 %v718_v22, %v717_v11  ;;  %v886_v29 = vadd.f32 -0.5, %v1120_v17  ;;  %1139 = vrcp.f32 %v646_v16 }
 0x336   :  { %v1124_v30 = vpop.eup %1123  ;;  %968 = vst [vmem:[#allocation2 + $0x8] sm:$0xff] %v936_v21   ;;  %v884_v19 = vadd.f32 -0.5, %v1122_v23  ;;  %1141 = vrcp.f32 %v644_v46 }
 0x337   :  { %v1126_v31 = vpop.eup %1125  ;;  %932 = vst [vmem:[#allocation2] sm:$0xff] %v931_v27   ;;  %v705_v26 = vmul.f32 2.0, %v886_v29  ;;  %v887_v32 = vadd.f32 -0.5, %v1124_v30 }
 0x338   :  { %v1128_v34 = vpop.eup %1127  ;;  %v703_v35 = vmul.f32 2.0, %v884_v19  ;;  %v885_v36 = vadd.f32 -0.5, %v1126_v31 }
 0x339   :  { %v1130_v37 = vpop.eup %1129  ;;  %v706_v33 = vmul.f32 2.0, %v887_v32  ;;  %v649_v52 = vadd.f32 1.0, %v1128_v34  ;;  %v723_v40 = vsel %vm1439_vm4, %v705_v26, %v1391_v56 }
 0x33a   :  { %v1132_v38 = vpop.eup %1131  ;;  %v704_v41 = vmul.f32 2.0, %v885_v36  ;;  %v647_v4 = vadd.f32 1.0, %v1130_v37  ;;  %v721_v13 = vsel %vm1439_vm4, %v703_v35, %v1394_v58 }
 0x33b   :  { %v1134_v43 = vpop.eup %1133  ;;  %v724_v18 = vsel %vm1439_vm4, %v706_v33, %v1398_v61  ;;  %1143 = vrcp.f32 %v649_v52  ;;  %v650_v45 = vadd.f32 1.0, %v1132_v38 }
 0x33c   :  { %v946_v25 = vpack.c.bf16 %v724_v18, %v723_v40  ;;  %v722_v15 = vsel %vm1439_vm4, %v704_v41, %v1402_v0  ;;  %1145 = vrcp.f32 %v647_v4  ;;  %v648_v56 = vadd.f32 1.0, %v1134_v43 }
 0x33d   :  { %v1136_v48 = vpop.eup %1135  ;;  %v941_v49 = vpack.c.bf16 %v722_v15, %v721_v13  ;;  %1147 = vrcp.f32 %v650_v45 }
 0x33e   :  { %v1138_v50 = vpop.eup %1137  ;;  %970 = vst [vmem:[#allocation2 + $0x18] sm:$0xff] %v946_v25   ;;  %v890_v51 = vadd.f32 -0.5, %v1136_v48  ;;  %1149 = vrcp.f32 %v648_v56 }
 0x33f   :  { %v1140_v58 = vpop.eup %1139  ;;  %969 = vst [vmem:[#allocation2 + $0x10] sm:$0xff] %v941_v49   ;;  %v888_v53 = vadd.f32 -0.5, %v1138_v50 }
 0x340   :  { %v1142_v61 = vpop.eup %1141  ;;  %v709_v54 = vmul.f32 2.0, %v890_v51  ;;  %v891_v55 = vadd.f32 -0.5, %v1140_v58 }
 0x341   :  { %v707_v59 = vmul.f32 2.0, %v888_v53  ;;  %v889_v60 = vadd.f32 -0.5, %v1142_v61 }
 0x342   :  { %v710_v14 = vmul.f32 2.0, %v891_v55  ;;  %v727_v0 = vsel %vm1439_vm4, %v709_v54, %v1407_v10 }
 0x343   :  { %v708_v62 = vmul.f32 2.0, %v889_v60  ;;  %v725_v2 = vsel %vm1439_vm4, %v707_v59, %v1410_v20 }
 0x344   :  { %v728_v63 = vsel %vm1439_vm4, %v710_v14, %v1414_v24 }
 0x345   :  { %v1144_v1 = vpop.eup %1143  ;;  %v956_v3 = vpack.c.bf16 %v728_v63, %v727_v0  ;;  %v726_v5 = vsel %vm1439_vm4, %v708_v62, %v1418_v28 }
 0x346   :  { %v1146_v6 = vpop.eup %1145  ;;  %v951_v7 = vpack.c.bf16 %v726_v5, %v725_v2  ;;  %v894_v8 = vadd.f32 -0.5, %v1144_v1 }
 0x347   :  { %v1148_v9 = vpop.eup %1147  ;;  %972 = vst [vmem:[#allocation2 + $0x28] sm:$0xff] %v956_v3   ;;  %v892_v10 = vadd.f32 -0.5, %v1146_v6 }
 0x348   :  { %v1150_v11 = vpop.eup %1149  ;;  %971 = vst [vmem:[#allocation2 + $0x20] sm:$0xff] %v951_v7   ;;  %v713_v12 = vmul.f32 2.0, %v894_v8  ;;  %v895_v24 = vadd.f32 -0.5, %v1148_v9 }
 0x349   :  { %v711_v16 = vmul.f32 2.0, %v892_v10  ;;  %v893_v17 = vadd.f32 -0.5, %v1150_v11 }
 0x34a   :  { %v714_v21 = vmul.f32 2.0, %v895_v24  ;;  %v731_v28 = vsel %vm1439_vm4, %v713_v12, %v1423_v39 }
 0x34b   :  { %v712_v20 = vmul.f32 2.0, %v893_v17  ;;  %v729_v46 = vsel %vm1439_vm4, %v711_v16, %v1426_v42 }
 0x34c   :  { %v732_v22 = vsel %vm1439_vm4, %v714_v21, %v1430_v44 }
 0x34d   :  { %v966_v23 = vpack.c.bf16 %v732_v22, %v731_v28  ;;  %v730_v27 = vsel %vm1439_vm4, %v712_v20, %v1434_v47 }
 0x34e   :  { %v961_v29 = vpack.c.bf16 %v730_v27, %v729_v46 }
 0x34f   :  { %974 = vst [vmem:[#allocation2 + $0x38] sm:$0xff] %v966_v23  }
 0x350   :  { %973 = vst [vmem:[#allocation2 + $0x30] sm:$0xff] %v961_v29  }
 0x351   :  { %1162 = shalt.err (!%p1159_p4)
}
 0x352   :  { %s1163_s30 = scalar_lea.hbm %s1510_s7, 1024 }
 0x353   :  { %p1164_p5 = scmp.ne.s32.totalorder %s1510_s7, %s1163_s30  ;;  %p1167_p6 = scmp.lt.u32.totalorder %s1163_s30, %s1510_s7 }
 0x355   :  { %p1169_p7 = pnand %p1167_p6, %p1164_p5 }
 0x357   :  { %1172 = shalt.err (!%p1169_p7)
}
 0x358   :  { %s1177_s1 = smov 64   ;;  %s1178_s12 = smov 4  }
 0x359   :  { %824 = dma.vmem_to_hbm [thread:$0]  %s819_s26, 1024, %s1510_s7, [#allocation3], %s1177_s1, %s1177_s1, %s1178_s12  }
 0x35a   :  { %1173 = dma.done.wait [#allocation3], 1024  }
 0x35b   :  { %1174 = vsyncadd [#allocation3], 4294966272 }
 0x35c   :  { %828 = vsyncpa [#allocation3], 1 }

</bundles_post_ra>
